<compile_context>
chip_gen: v5e
topology: v5e:2x2
jax: 0.10.0
libtpu: 0.0.40
codegen_flags: <defaults>
</compile_context>

<pallas_src>
import jax
import jax.numpy as jnp
from jax.experimental import pallas as pl
from jax.experimental.pallas import tpu as pltpu


def _hbm_copy_kernel(x_hbm_ref, o_hbm_ref, sem):
    # Single HBM->HBM DMA of the whole (B, M*N) slab: the kernel issues one
    # DMA descriptor and waits on its semaphore.  No VMEM, no vld/vst.
    cp = pltpu.make_async_copy(x_hbm_ref, o_hbm_ref, sem)
    cp.start()
    cp.wait()


def channel_combine(x: jax.Array, num_channels_to_combine: int) -> jax.Array:
    """Pallas implementation of ChannelCombiner.forward."""
    c = num_channels_to_combine
    assert x.ndim >= 2, "input must have at least 2 dims"
    *lead, m, n = x.shape
    assert m % c == 0, (
        "second-to-last dim must be divisible by num_channels_to_combine")
    out_shape = tuple(lead) + (m // c, c * n)

    # Flatten to (B, M*N): contiguous row-major, metadata-only reshape.
    b = 1
    for d in lead:
        b *= d
    mn = m * n
    flat = x.reshape(b, mn)

    itemsize = jnp.dtype(x.dtype).itemsize
    out_flat = pl.pallas_call(
        _hbm_copy_kernel,
        out_shape=jax.ShapeDtypeStruct((b, mn), x.dtype),
        in_specs=[pl.BlockSpec(memory_space=pl.ANY)],   # raw HBM ref, no auto-DMA
        out_specs=pl.BlockSpec(memory_space=pl.ANY),    # raw HBM ref, we DMA into it
        scratch_shapes=[pltpu.SemaphoreType.DMA],
        cost_estimate=pl.CostEstimate(
            flops=0,
            transcendentals=0,
            bytes_accessed=2 * b * mn * itemsize,        # read + write
        ),
    )(flat)

    # Final grouping reshape is contiguous row-major -> metadata only.
    return out_flat.reshape(out_shape)


def _reference(x, c):
    return x.reshape(x.shape[:-2] + (x.shape[-2] // c, c * x.shape[-1]))


if __name__ == "__main__":
    key = jax.random.PRNGKey(0)

    # Main case: leading batch dims + (M=16 channels, N=16 features), C=4.
    c = 4
    x = jax.random.normal(key, (2, 4, 16, 16), dtype=jnp.float32)
    out = jax.block_until_ready(channel_combine(x, c))
    ref = _reference(x, c)
    assert out.shape == ref.shape and out.dtype == ref.dtype, (out.shape, ref.shape)
    assert jnp.array_equal(out, ref), "mismatch vs reference reshape (4D f32)"

    # Secondary case: single leading dim, C=2.
    x2 = jax.random.normal(jax.random.PRNGKey(0), (2, 8, 16), dtype=jnp.float32)
    out2 = jax.block_until_ready(channel_combine(x2, 2))
    ref2 = _reference(x2, 2)
    assert out2.shape == ref2.shape
    assert jnp.array_equal(out2, ref2), "mismatch vs reference reshape (3D f32)"

    # Low-precision case (sublane packing is irrelevant on the DMA path, but
    # verify bf16 round-trips bit-exactly too).
    x3 = jax.random.normal(jax.random.PRNGKey(0), (2, 4, 16, 16),
                           dtype=jnp.bfloat16)
    out3 = jax.block_until_ready(channel_combine(x3, 4))
    ref3 = _reference(x3, 4)
    assert out3.shape == ref3.shape and out3.dtype == ref3.dtype
    assert jnp.array_equal(out3, ref3), "mismatch vs reference reshape (bf16)"

    print("KERNEL_OK")
</pallas_src>

<mosaic_0001>
module attributes {stable_mosaic.version = 11 : i64} {
  func.func @_hbm_copy_kernel(%arg0: memref<8x256xf32, #tpu.memory_space<any>>, %arg1: memref<8x256xf32, #tpu.memory_space<any>>, %arg2: memref<!tpu.dma_semaphore, #tpu.memory_space<semaphore_mem>>) attributes {dimension_semantics = [], scalar_prefetch = 0 : i64, scratch_operands = 1 : i64, tpu.core_type = #tpu.core_type<tc>} {
    tpu.enqueue_dma source(%arg0 : memref<8x256xf32, #tpu.memory_space<any>>) target(%arg1 : memref<8x256xf32, #tpu.memory_space<any>>) target_semaphore(%arg2 : memref<!tpu.dma_semaphore, #tpu.memory_space<semaphore_mem>>)
    tpu.wait_dma2 semaphore(%arg2 : memref<!tpu.dma_semaphore, #tpu.memory_space<semaphore_mem>>) src(%arg0 : memref<8x256xf32, #tpu.memory_space<any>>) dst(%arg1 : memref<8x256xf32, #tpu.memory_space<any>>)
    return
  }
}

</mosaic_0001>

<bundles_post_ra>
// kernel: tpu_custom_call.1
= control target key start
LH: loop header
LB: loop body
LE: loop exit
PB: predicated region body
PF: predicated region fallthrough
CT: control target
= control target key end

     0   :  { %s33_s12 = smov [#allocation2]   ;;  %s34_s13 = smov [#allocation3]   ;;  %s52_s0 = inlined_call_operand.hbm [shape: f32[8,256], index: 0, kind: input, shape index: {}]   ;;  %s53_s1 = inlined_call_operand.hbm [shape: f32[8,256], index: 1, kind: output, shape index: {}]  }
   0x1   :  { %s10_s8 = sshll.u32 %s52_s0, 4  ;;  %s12_s11 = sshll.u32 %s53_s1, 4  ;;  %s11_s8 = int_to_ptr.hbm [resolvable:$true] %s10_s8  ;;  %s13_s11 = int_to_ptr.hbm [resolvable:$true] %s12_s11 }
   0x2   :  { %s35_s14 = smov 0  }
   0x3   :  { %16 = dma.general %s11_s8, 256, %s13_s11, %s33_s12, %s34_s13, [#allocation4], %s35_s14, 0  }
   0x4   :  { %31 = dma.done.wait [#allocation2], 256 }
   0x5   :  { %32 = vsyncadd [#allocation2], 4294967040 }
   0x6   :  { %21 = vsyncmov [#allocation2] }
   0x9   :  { %s22_s15 = vpop.sfrf %21 }
   0xa   :  { %p27_p0 = scmp.ne.s32.totalorder %s22_s15, 0 }
   0xc   :  { %26 = shalt.err (%p27_p0)  }

</bundles_post_ra>
